<compile_context>
chip_gen: v7x
topology: tpu7x:2x2x1
jax: 0.10.0
libtpu: 0.0.40
codegen_flags: <defaults>
</compile_context>

<pallas_src>
import math
import numpy as np
import jax
import jax.numpy as jnp
from jax.experimental import pallas as pl
from jax.experimental.pallas import tpu as pltpu


def gat_model_kernel(x_ref, we_ref, pebe_ref, wl_ref, bl_ref, wr_ref, br_ref,
                     att_ref, mask_ref, wfc_ref, bfc_ref, out_ref):
    """One grid step processes a block of G graphs, batched through the MXU."""
    G, N, Din = x_ref.shape
    H = we_ref.shape[1]

    # ---- expander Linear + (positional encoding with folded expander bias) --
    # One (G*N, Din) matmul fills the MXU M-dimension with the whole block.
    x = x_ref[...].reshape(G * N, Din)
    h = jnp.dot(x, we_ref[...], preferred_element_type=jnp.float32)       # (G*N, H)
    h = h + jnp.tile(pebe_ref[...], (G, 1))                                # pe + be, per graph

    # ---- GATv2 projections: two lane-aligned (H, H) matmuls ----------------
    # (Only the LAST layer survives the reference forward(): every conv reads
    #  batch.x, so earlier layers are dead compute and skipped.  Separate
    #  lin_l / lin_r matmuls avoid the lane-offset-H slice a fused projection
    #  would need at H=32.)
    xl = (jnp.dot(h, wl_ref[...], preferred_element_type=jnp.float32)
          + bl_ref[...]).reshape(G, N, H)                                  # source side (lin_l)
    xr = (jnp.dot(h, wr_ref[...], preferred_element_type=jnp.float32)
          + br_ref[...]).reshape(G, N, H)                                  # target side (lin_r)

    # ---- GATv2 logits: e[g,t,s] = att . leaky_relu(xr[g,t] + xl[g,s]) ------
    # TODO(synk): if N grows, the (G, N, N, H) pairwise intermediate needs a
    # flash-style source-tiled online softmax (VMEM grows as N^2*H; hits v7x's
    # smaller VMEM first).
    s = xr[:, :, None, :] + xl[:, None, :, :]                              # (G, Nt, Ns, H)
    s = jnp.where(s >= 0, s, 0.2 * s)                                      # LeakyReLU, slope 0.2
    e = jnp.sum(s * att_ref[...].reshape(1, 1, 1, H), axis=-1)             # (G, Nt, Ns)

    # ---- masked softmax over source nodes (additive 0 / -1e30 mask bias) ---
    e = e + mask_ref[...][None, :, :]
    m = jnp.max(e, axis=-1, keepdims=True)
    p = jnp.exp(e - m)                                                     # masked lanes -> 0
    alpha = p / jnp.sum(p, axis=-1, keepdims=True)                         # exact divide (parity)

    # ---- aggregate messages, global_add_pool, classifier head --------------
    # (GATv2 output bias bg pools to N*bg and is folded into the fc bias on
    #  the host; fc weight/bias are zero-padded to 128 lanes so this store is
    #  a full, unmasked vst.)
    node_out = jnp.einsum('gts,gsh->gth', alpha, xl,
                          preferred_element_type=jnp.float32)              # (G, N, H)
    pooled = jnp.sum(node_out, axis=1)                                     # (G, H)
    out_ref[...] = (jnp.dot(pooled, wfc_ref[...],
                            preferred_element_type=jnp.float32)
                    + bfc_ref[...])                                        # (G, Cpad)


def prepare_params(params, pe, mask_bias, n_nodes, lane=128):
    """One-time host-side parameter prep (layer selection, bias folds, padding)."""
    C = params['wfc_T'].shape[1]
    c_pad = ((C + lane - 1) // lane) * lane

    # Only the last GATv2 layer's output survives the reference forward().
    wl, bl = params['wl_T'][-1], params['bl'][-1]
    wr, br = params['wr_T'][-1], params['br'][-1]
    att, bg = params['att'][-1], params['bg'][-1]

    # Bias folds: expander bias into the positional encoding; GATv2 output
    # bias (pools to N*bg) into the fc bias.  fc is zero-padded to 128 lanes.
    pe_be = pe + params['be']                                              # (N, H)
    bfc_fold = params['bfc'] + n_nodes * jnp.dot(bg, params['wfc_T'])      # (1, C)
    wfc_p = jnp.pad(params['wfc_T'], ((0, 0), (0, c_pad - C)))             # (H, Cpad)
    bfc_p = jnp.pad(bfc_fold, ((0, 0), (0, c_pad - C)))                    # (1, Cpad)

    return {
        'we_T': params['we_T'], 'pe_be': pe_be,
        'wl_T': wl, 'bl': bl, 'wr_T': wr, 'br': br, 'att': att,
        'mask': mask_bias, 'wfc_T': wfc_p, 'bfc': bfc_p,
        'num_classes': C, 'c_pad': c_pad,
    }


def gat_model_forward(x, prepped, *, graphs_per_block=None):
    B, N, Din = x.shape
    H = prepped['we_T'].shape[1]
    C = prepped['num_classes']
    c_pad = prepped['c_pad']

    # Amortize per-step overhead and fill the MXU M-dim: process G graphs per
    # grid step (the whole batch in one step when it is small / latency-bound).
    if graphs_per_block is None:
        target = max(1, 256 // N)                  # ~256 rows fills v6e/v7x MXU
        G = B if B <= target else math.gcd(B, target)
        # output block's sublane dim must be a multiple of 8 or span all of B
        if G != B and G % 8 != 0:
            G = B
    else:
        G = graphs_per_block
    assert B % G == 0, "graphs_per_block must divide the batch size"

    def fixed(shape):
        nd = len(shape)
        return pl.BlockSpec(shape, lambda b, _nd=nd: (0,) * _nd)

    out = pl.pallas_call(
        gat_model_kernel,
        grid=(B // G,),
        out_shape=jax.ShapeDtypeStruct((B, c_pad), jnp.float32),
        in_specs=[
            pl.BlockSpec((G, N, Din), lambda b: (b, 0, 0)),  # x: G graphs / step
            fixed((Din, H)),                                  # expander weight
            fixed((N, H)),                                    # pe + expander bias
            fixed((H, H)),                                    # lin_l weight
            fixed((1, H)),                                    # lin_l bias
            fixed((H, H)),                                    # lin_r weight
            fixed((1, H)),                                    # lin_r bias
            fixed((1, H)),                                    # att vector
            fixed((N, N)),                                    # additive edge-mask bias
            fixed((H, c_pad)),                                # fc weight (lane-padded)
            fixed((1, c_pad)),                                # fc bias (bg folded, padded)
        ],
        out_specs=pl.BlockSpec((G, c_pad), lambda b: (b, 0)), # lane-dense store
        compiler_params=pltpu.CompilerParams(
            dimension_semantics=("parallel",)),               # v7x: TCs split blocks
    )(x, prepped['we_T'], prepped['pe_be'], prepped['wl_T'], prepped['bl'],
      prepped['wr_T'], prepped['br'], prepped['att'], prepped['mask'],
      prepped['wfc_T'], prepped['bfc'])
    return out[:, :C]                                         # strip lane padding


def make_positional_encoding(n, d_model):
    pos = np.arange(n, dtype=np.float32)[:, None]
    div = np.exp(np.arange(0, d_model, 2, dtype=np.float32)
                 * (-np.log(10000.0) / d_model))
    pe = np.zeros((n, d_model), dtype=np.float32)
    pe[:, 0::2] = np.sin(pos * div)
    pe[:, 1::2] = np.cos(pos * div)
    return jnp.asarray(pe)


def make_chain_mask_bias(n):
    # bidirectional chain edges (i, i+1)/(i+1, i) plus self loops -> |i-j| <= 1,
    # pre-baked as an additive softmax bias: 0 where connected, -1e30 elsewhere.
    idx = np.arange(n)
    connected = np.abs(idx[:, None] - idx[None, :]) <= 1
    return jnp.asarray(np.where(connected, 0.0, -1e30).astype(np.float32))


def init_params(key, input_size, hidden, num_layers, num_classes):
    ks = jax.random.split(key, 12)
    f = lambda k, s: (0.1 * jax.random.normal(k, s)).astype(jnp.float32)
    return {
        # expander: Linear(input_size, hidden)
        'we_T': f(ks[0], (input_size, hidden)),
        'be':   f(ks[1], (1, hidden)),
        # GATv2Conv layers (heads=1): lin_l, lin_r, att, bias
        'wl_T': f(ks[2], (num_layers, hidden, hidden)),
        'bl':   f(ks[3], (num_layers, 1, hidden)),
        'wr_T': f(ks[4], (num_layers, hidden, hidden)),
        'br':   f(ks[5], (num_layers, 1, hidden)),
        'att':  f(ks[6], (num_layers, 1, hidden)),
        'bg':   f(ks[7], (num_layers, 1, hidden)),
        # fc: Linear(hidden, num_classes)
        'wfc_T': f(ks[8], (hidden, num_classes)),
        'bfc':   f(ks[9], (1, num_classes)),
    }


if __name__ == "__main__":
    B, N = 2, 8                 # batch of graphs, nodes per graph (seq len)
    input_size, hidden = 4, 32
    num_layers, num_classes = 2, 3

    key = jax.random.PRNGKey(0)
    kx, kp = jax.random.split(key)
    x = jax.random.normal(kx, (B, N, input_size), dtype=jnp.float32)

    params = init_params(kp, input_size, hidden, num_layers, num_classes)
    pe = make_positional_encoding(N, hidden)
    mask_bias = make_chain_mask_bias(N)     # fully_connected=False path of the module

    prepped = prepare_params(params, pe, mask_bias, N)   # one-time host-side prep
    out = gat_model_forward(x, prepped)
    out = jax.block_until_ready(out)
    assert out.shape == (B, num_classes) and bool(jnp.all(jnp.isfinite(out)))
    # TODO(synk): sample_action() epsilon-greedy is host-side control flow / RNG,
    # not kernel compute; only forward() is implemented in Pallas.
    print("KERNEL_OK")
</pallas_src>

<mosaic_0001>
module attributes {stable_mosaic.version = 11 : i64} {
  func.func @gat_model_kernel(%arg0: i32, %arg1: memref<2x8x4xf32, #tpu.memory_space<vmem>>, %arg2: memref<4x32xf32, #tpu.memory_space<vmem>>, %arg3: memref<8x32xf32, #tpu.memory_space<vmem>>, %arg4: memref<32x32xf32, #tpu.memory_space<vmem>>, %arg5: memref<1x32xf32, #tpu.memory_space<vmem>>, %arg6: memref<32x32xf32, #tpu.memory_space<vmem>>, %arg7: memref<1x32xf32, #tpu.memory_space<vmem>>, %arg8: memref<1x32xf32, #tpu.memory_space<vmem>>, %arg9: memref<8x8xf32, #tpu.memory_space<vmem>>, %arg10: memref<32x128xf32, #tpu.memory_space<vmem>>, %arg11: memref<1x128xf32, #tpu.memory_space<vmem>>, %arg12: memref<2x128xf32, #tpu.memory_space<vmem>>) attributes {dimension_semantics = [#tpu.dimension_semantics<parallel>], iteration_bounds = array<i64: 1>, scalar_prefetch = 0 : i64, scratch_operands = 0 : i64, tpu.core_type = #tpu.core_type<tc>, window_params = [{transform_indices = @transform_0, window_bounds = array<i64: 2, 8, 4>}, {pipeline_mode = #tpu.pipeline_mode<synchronous>, transform_indices = @transform_1, window_bounds = array<i64: 4, 32>}, {pipeline_mode = #tpu.pipeline_mode<synchronous>, transform_indices = @transform_2, window_bounds = array<i64: 8, 32>}, {pipeline_mode = #tpu.pipeline_mode<synchronous>, transform_indices = @transform_3, window_bounds = array<i64: 32, 32>}, {pipeline_mode = #tpu.pipeline_mode<synchronous>, transform_indices = @transform_4, window_bounds = array<i64: 1, 32>}, {pipeline_mode = #tpu.pipeline_mode<synchronous>, transform_indices = @transform_5, window_bounds = array<i64: 32, 32>}, {pipeline_mode = #tpu.pipeline_mode<synchronous>, transform_indices = @transform_6, window_bounds = array<i64: 1, 32>}, {pipeline_mode = #tpu.pipeline_mode<synchronous>, transform_indices = @transform_7, window_bounds = array<i64: 1, 32>}, {pipeline_mode = #tpu.pipeline_mode<synchronous>, transform_indices = @transform_8, window_bounds = array<i64: 8, 8>}, {pipeline_mode = #tpu.pipeline_mode<synchronous>, transform_indices = @transform_9, window_bounds = array<i64: 32, 128>}, {pipeline_mode = #tpu.pipeline_mode<synchronous>, transform_indices = @transform_10, window_bounds = array<i64: 1, 128>}, {transform_indices = @transform_11, window_bounds = array<i64: 2, 128>}]} {
    %c0 = arith.constant 0 : index
    %c0_0 = arith.constant 0 : index
    %c0_1 = arith.constant 0 : index
    %0 = vector.load %arg1[%c0, %c0_0, %c0_1] : memref<2x8x4xf32, #tpu.memory_space<vmem>>, vector<2x8x4xf32>
    %1 = vector.shape_cast %0 : vector<2x8x4xf32> to vector<16x4xf32>
    %c0_2 = arith.constant 0 : index
    %c0_3 = arith.constant 0 : index
    %2 = vector.load %arg2[%c0_2, %c0_3] : memref<4x32xf32, #tpu.memory_space<vmem>>, vector<4x32xf32>
    %cst = arith.constant dense<0.000000e+00> : vector<16x32xf32>
    %3 = tpu.matmul %1, %2, %cst {dimension_numbers = #tpu.dot_dimension_numbers<[1], [0], [0], [1], [0, 0, 1, 1], [], []>} : vector<16x4xf32>, vector<4x32xf32>, vector<16x32xf32> -> vector<16x32xf32>
    %c0_4 = arith.constant 0 : index
    %c0_5 = arith.constant 0 : index
    %4 = vector.load %arg3[%c0_4, %c0_5] : memref<8x32xf32, #tpu.memory_space<vmem>>, vector<8x32xf32>
    %5 = tpu.concatenate %4, %4 in 0 : vector<8x32xf32>, vector<8x32xf32> -> vector<16x32xf32>
    %6 = arith.addf %3, %5 : vector<16x32xf32>
    %c0_6 = arith.constant 0 : index
    %c0_7 = arith.constant 0 : index
    %7 = vector.load %arg4[%c0_6, %c0_7] : memref<32x32xf32, #tpu.memory_space<vmem>>, vector<32x32xf32>
    %cst_8 = arith.constant dense<0.000000e+00> : vector<16x32xf32>
    %8 = tpu.matmul %6, %7, %cst_8 {dimension_numbers = #tpu.dot_dimension_numbers<[1], [0], [0], [1], [0, 0, 1, 1], [], []>} : vector<16x32xf32>, vector<32x32xf32>, vector<16x32xf32> -> vector<16x32xf32>
    %c0_9 = arith.constant 0 : index
    %c0_10 = arith.constant 0 : index
    %9 = vector.load %arg5[%c0_9, %c0_10] : memref<1x32xf32, #tpu.memory_space<vmem>>, vector<1x32xf32>
    %10 = vector.broadcast %9 : vector<1x32xf32> to vector<16x32xf32>
    %11 = arith.addf %8, %10 : vector<16x32xf32>
    %12 = vector.shape_cast %11 : vector<16x32xf32> to vector<2x8x32xf32>
    %c0_11 = arith.constant 0 : index
    %c0_12 = arith.constant 0 : index
    %13 = vector.load %arg6[%c0_11, %c0_12] : memref<32x32xf32, #tpu.memory_space<vmem>>, vector<32x32xf32>
    %cst_13 = arith.constant dense<0.000000e+00> : vector<16x32xf32>
    %14 = tpu.matmul %6, %13, %cst_13 {dimension_numbers = #tpu.dot_dimension_numbers<[1], [0], [0], [1], [0, 0, 1, 1], [], []>} : vector<16x32xf32>, vector<32x32xf32>, vector<16x32xf32> -> vector<16x32xf32>
    %c0_14 = arith.constant 0 : index
    %c0_15 = arith.constant 0 : index
    %15 = vector.load %arg7[%c0_14, %c0_15] : memref<1x32xf32, #tpu.memory_space<vmem>>, vector<1x32xf32>
    %16 = vector.broadcast %15 : vector<1x32xf32> to vector<16x32xf32>
    %17 = arith.addf %14, %16 : vector<16x32xf32>
    %18 = vector.shape_cast %17 : vector<16x32xf32> to vector<2x8x32xf32>
    %19 = vector.shape_cast %18 : vector<2x8x32xf32> to vector<2x8x1x32xf32>
    %20 = vector.shape_cast %12 : vector<2x8x32xf32> to vector<2x1x8x32xf32>
    %21 = vector.broadcast %19 : vector<2x8x1x32xf32> to vector<2x8x8x32xf32>
    %22 = vector.broadcast %20 : vector<2x1x8x32xf32> to vector<2x8x8x32xf32>
    %23 = arith.addf %21, %22 : vector<2x8x8x32xf32>
    %cst_16 = arith.constant 0.000000e+00 : f32
    %24 = vector.broadcast %cst_16 : f32 to vector<2x8x8x32xf32>
    %25 = arith.cmpf oge, %23, %24 : vector<2x8x8x32xf32>
    %cst_17 = arith.constant 2.000000e-01 : f32
    %26 = vector.broadcast %cst_17 : f32 to vector<2x8x8x32xf32>
    %27 = arith.mulf %26, %23 : vector<2x8x8x32xf32>
    %28 = arith.select %25, %23, %27 : vector<2x8x8x32xi1>, vector<2x8x8x32xf32>
    %c0_18 = arith.constant 0 : index
    %c0_19 = arith.constant 0 : index
    %29 = vector.load %arg8[%c0_18, %c0_19] : memref<1x32xf32, #tpu.memory_space<vmem>>, vector<1x32xf32>
    %30 = vector.shape_cast %29 : vector<1x32xf32> to vector<1x1x1x32xf32>
    %31 = vector.broadcast %30 : vector<1x1x1x32xf32> to vector<2x8x8x32xf32>
    %32 = arith.mulf %28, %31 : vector<2x8x8x32xf32>
    %cst_20 = arith.constant dense<0.000000e+00> : vector<2x8x8xf32>
    %33 = vector.multi_reduction <add>, %32, %cst_20 [3] : vector<2x8x8x32xf32> to vector<2x8x8xf32>
    %c0_21 = arith.constant 0 : index
    %c0_22 = arith.constant 0 : index
    %34 = vector.load %arg9[%c0_21, %c0_22] : memref<8x8xf32, #tpu.memory_space<vmem>>, vector<8x8xf32>
    %35 = vector.shape_cast %34 : vector<8x8xf32> to vector<1x8x8xf32>
    %36 = vector.broadcast %35 : vector<1x8x8xf32> to vector<2x8x8xf32>
    %37 = arith.addf %33, %36 : vector<2x8x8xf32>
    %cst_23 = arith.constant dense<0xFF800000> : vector<2x8xf32>
    %38 = vector.multi_reduction <maximumf>, %37, %cst_23 [2] : vector<2x8x8xf32> to vector<2x8xf32>
    %39 = vector.shape_cast %38 : vector<2x8xf32> to vector<2x8x1xf32>
    %40 = vector.broadcast %39 : vector<2x8x1xf32> to vector<2x8x8xf32>
    %41 = arith.subf %37, %40 : vector<2x8x8xf32>
    %42 = math.exp %41 : vector<2x8x8xf32>
    %cst_24 = arith.constant dense<0.000000e+00> : vector<2x8xf32>
    %43 = vector.multi_reduction <add>, %42, %cst_24 [2] : vector<2x8x8xf32> to vector<2x8xf32>
    %44 = vector.shape_cast %43 : vector<2x8xf32> to vector<2x8x1xf32>
    %45 = vector.broadcast %44 : vector<2x8x1xf32> to vector<2x8x8xf32>
    %46 = arith.divf %42, %45 : vector<2x8x8xf32>
    "tpu.trace_start"() <{level = 10 : i32, message = "gts,gsh->gth"}> : () -> ()
    %cst_25 = arith.constant dense<0.000000e+00> : vector<2x8x32xf32>
    %47 = tpu.matmul %46, %12, %cst_25 {dimension_numbers = #tpu.dot_dimension_numbers<[2], [1], [1], [2], [0, 0, 0, 1, 1, 2], [0], [0]>} : vector<2x8x8xf32>, vector<2x8x32xf32>, vector<2x8x32xf32> -> vector<2x8x32xf32>
    "tpu.trace_stop"() : () -> ()
    %cst_26 = arith.constant dense<0.000000e+00> : vector<2x32xf32>
    %48 = vector.multi_reduction <add>, %47, %cst_26 [1] : vector<2x8x32xf32> to vector<2x32xf32>
    %c0_27 = arith.constant 0 : index
    %c0_28 = arith.constant 0 : index
    %49 = vector.load %arg10[%c0_27, %c0_28] : memref<32x128xf32, #tpu.memory_space<vmem>>, vector<32x128xf32>
    %cst_29 = arith.constant dense<0.000000e+00> : vector<2x128xf32>
    %50 = tpu.matmul %48, %49, %cst_29 {dimension_numbers = #tpu.dot_dimension_numbers<[1], [0], [0], [1], [0, 0, 1, 1], [], []>} : vector<2x32xf32>, vector<32x128xf32>, vector<2x128xf32> -> vector<2x128xf32>
    %c0_30 = arith.constant 0 : index
    %c0_31 = arith.constant 0 : index
    %51 = vector.load %arg11[%c0_30, %c0_31] : memref<1x128xf32, #tpu.memory_space<vmem>>, vector<1x128xf32>
    %52 = vector.broadcast %51 : vector<1x128xf32> to vector<2x128xf32>
    %53 = arith.addf %50, %52 : vector<2x128xf32>
    %c0_32 = arith.constant 0 : index
    %c0_33 = arith.constant 0 : index
    %54 = vector.load %arg12[%c0_32, %c0_33] : memref<2x128xf32, #tpu.memory_space<vmem>>, vector<2x128xf32>
    tpu.vector_store %arg12[%c0_32, %c0_33], %53 {strides = array<i32>} : memref<2x128xf32, #tpu.memory_space<vmem>>, vector<2x128xf32>,
    return
  }
  func.func @transform_0(%arg0: i32) -> (i32, i32, i32) {
    %c0_i32 = arith.constant 0 : i32
    %c0_i32_0 = arith.constant 0 : i32
    %c0_i32_1 = arith.constant 0 : i32
    return %arg0, %c0_i32, %c0_i32_0 : i32, i32, i32
  }
  func.func @transform_1(%arg0: i32) -> (i32, i32) {
    %c0_i32 = arith.constant 0 : i32
    %c0_i32_0 = arith.constant 0 : i32
    %c0_i32_1 = arith.constant 0 : i32
    return %c0_i32, %c0_i32_0 : i32, i32
  }
  func.func @transform_2(%arg0: i32) -> (i32, i32) {
    %c0_i32 = arith.constant 0 : i32
    %c0_i32_0 = arith.constant 0 : i32
    %c0_i32_1 = arith.constant 0 : i32
    return %c0_i32, %c0_i32_0 : i32, i32
  }
  func.func @transform_3(%arg0: i32) -> (i32, i32) {
    %c0_i32 = arith.constant 0 : i32
    %c0_i32_0 = arith.constant 0 : i32
    %c0_i32_1 = arith.constant 0 : i32
    return %c0_i32, %c0_i32_0 : i32, i32
  }
  func.func @transform_4(%arg0: i32) -> (i32, i32) {
    %c0_i32 = arith.constant 0 : i32
    %c0_i32_0 = arith.constant 0 : i32
    %c0_i32_1 = arith.constant 0 : i32
    return %c0_i32, %c0_i32_0 : i32, i32
  }
  func.func @transform_5(%arg0: i32) -> (i32, i32) {
    %c0_i32 = arith.constant 0 : i32
    %c0_i32_0 = arith.constant 0 : i32
    %c0_i32_1 = arith.constant 0 : i32
    return %c0_i32, %c0_i32_0 : i32, i32
  }
  func.func @transform_6(%arg0: i32) -> (i32, i32) {
    %c0_i32 = arith.constant 0 : i32
    %c0_i32_0 = arith.constant 0 : i32
    %c0_i32_1 = arith.constant 0 : i32
    return %c0_i32, %c0_i32_0 : i32, i32
  }
  func.func @transform_7(%arg0: i32) -> (i32, i32) {
    %c0_i32 = arith.constant 0 : i32
    %c0_i32_0 = arith.constant 0 : i32
    %c0_i32_1 = arith.constant 0 : i32
    return %c0_i32, %c0_i32_0 : i32, i32
  }
  func.func @transform_8(%arg0: i32) -> (i32, i32) {
    %c0_i32 = arith.constant 0 : i32
    %c0_i32_0 = arith.constant 0 : i32
    %c0_i32_1 = arith.constant 0 : i32
    return %c0_i32, %c0_i32_0 : i32, i32
  }
  func.func @transform_9(%arg0: i32) -> (i32, i32) {
    %c0_i32 = arith.constant 0 : i32
    %c0_i32_0 = arith.constant 0 : i32
    %c0_i32_1 = arith.constant 0 : i32
    return %c0_i32, %c0_i32_0 : i32, i32
  }
  func.func @transform_10(%arg0: i32) -> (i32, i32) {
    %c0_i32 = arith.constant 0 : i32
    %c0_i32_0 = arith.constant 0 : i32
    %c0_i32_1 = arith.constant 0 : i32
    return %c0_i32, %c0_i32_0 : i32, i32
  }
  func.func @transform_11(%arg0: i32) -> (i32, i32) {
    %c0_i32 = arith.constant 0 : i32
    %c0_i32_0 = arith.constant 0 : i32
    return %arg0, %c0_i32 : i32, i32
  }
}

</mosaic_0001>

<bundles_post_ra>
// kernel: tpu_custom_call.1
= control target key start
LH: loop header
LB: loop body
LE: loop exit
PB: predicated region body
PF: predicated region fallthrough
CT: control target
= control target key end

     0   :  { %16 = vsyncpa [#allocation3], 0  ;;  %s2612_s0 = inlined_call_operand.vmem [shape: f32[2,8,4], index: 0, kind: input, shape index: {}]   ;;  %s2613_s1 = inlined_call_operand.hbm [shape: f32[4,32], index: 1, kind: input, shape index: {}]   ;;  %s2614_s2 = inlined_call_operand.hbm [shape: f32[8,32], index: 2, kind: input, shape index: {}]   ;;  %s2615_s3 = inlined_call_operand.vmem [shape: f32[32,32], index: 3, kind: input, shape index: {}]   ;;  %s2616_s4 = inlined_call_operand.vmem [shape: f32[1,32], index: 4, kind: input, shape index: {}]   ;;  %s2617_s5 = inlined_call_operand.hbm [shape: f32[32,32], index: 5, kind: input, shape index: {}]   ;;  %s2618_s6 = inlined_call_operand.vmem [shape: f32[1,32], index: 6, kind: input, shape index: {}]   ;;  %s2619_s7 = inlined_call_operand.vmem [shape: f32[1,32], index: 7, kind: input, shape index: {}]   ;;  %s2620_s8 = inlined_call_operand.vmem [shape: f32[8,8], index: 8, kind: input, shape index: {}]   ;;  %s2621_s9 = inlined_call_operand.hbm [shape: f32[32,128], index: 9, kind: input, shape index: {}]   ;;  %s2622_s10 = inlined_call_operand.vmem [shape: f32[1,128], index: 10, kind: input, shape index: {}]   ;;  %s2623_s11 = inlined_call_operand.hbm [shape: f32[2,128], index: 11, kind: output, shape index: {}]  }
   0x1   :  { %17 = vsyncpa [#allocation6], 0 }
   0x2   :  { %18 = vsyncpa [#allocation9], 0 }
   0x3   :  { %19 = vsyncpa [#allocation4], 0  ;;  %s2018_s17 = smov [#allocation5]   ;;  %s2019_s19 = smov [#allocation2]  }
   0x4   :  { %s38_s18 = sshll.u32 %s2018_s17, 4  ;;  %s28_s20 = sshll.u32 %s2019_s19, 4  ;;  %s39_s18 = int_to_ptr.vmem [resolvable:$true] %s38_s18  ;;  %s29_s20 = int_to_ptr.vmem [resolvable:$true] %s28_s20 }
   0x5   :  { %s1900_s23 = scalar_lea.hbm %s2614_s2, 128 }
   0x6   :  { %p1901_p0 = scmp.ne.s32.totalorder %s2614_s2, %s1900_s23  ;;  %p1904_p1 = scmp.lt.u32.totalorder %s1900_s23, %s2614_s2 }
   0x8   :  { %p1906_p2 = pnand %p1904_p1, %p1901_p0 }
   0xa   :  { %1909 = shalt.err (!%p1906_p2)
}
   0xb   :  { %s1910_s28 = scalar_lea.vmem %s39_s18, 128  ;;  %p1915_p4 = scmp.lt.s32.totalorder %s39_s18, %s39_s18 }
   0xc   :  { %p1911_p3 = scmp.ne.s32.totalorder %s39_s18, %s1910_s28  ;;  %p1916_p5 = scmp.lt.s32.totalorder %s1910_s28, %s1910_s28 }
   0xe   :  { %p1917_p6 = por %p1916_p5, %p1915_p4 }
  0x10   :  { %p1918_p7 = pnand %p1917_p6, %p1911_p3 }
  0x12   :  { %1921 = shalt.err (!%p1918_p7)
}
  0x13   :  { %41 = dma.hbm_to_vmem [thread:$0]  %s2614_s2, 128, %s39_s18, [#allocation6]  }
  0x14   :  { %s1922_s14 = scalar_lea.hbm %s2613_s1, 64 }
  0x15   :  { %p1923_p8 = scmp.ne.s32.totalorder %s2613_s1, %s1922_s14  ;;  %p1926_p9 = scmp.lt.u32.totalorder %s1922_s14, %s2613_s1 }
  0x17   :  { %p1928_p10 = pnand %p1926_p9, %p1923_p8 }
  0x19   :  { %1931 = shalt.err (!%p1928_p10)
}
  0x1a   :  { %s1932_s21 = scalar_lea.vmem %s29_s20, 64  ;;  %p1937_p12 = scmp.lt.s32.totalorder %s29_s20, %s29_s20 }
  0x1b   :  { %p1933_p11 = scmp.ne.s32.totalorder %s29_s20, %s1932_s21  ;;  %p1938_p13 = scmp.lt.s32.totalorder %s1932_s21, %s1932_s21 }
  0x1d   :  { %p1939_p0 = por %p1938_p13, %p1937_p12 }
  0x1f   :  { %p1940_p1 = pnand %p1939_p0, %p1933_p11 }
  0x21   :  { %1943 = shalt.err (!%p1940_p1)
}
  0x22   :  { %31 = dma.hbm_to_vmem [thread:$0]  %s2613_s1, 64, %s29_s20, [#allocation3]  }
  0x23   :  { %s2020_s22 = smov [#allocation7]   ;;  %s1944_s26 = scalar_lea.hbm %s2617_s5, 512 }
  0x24   :  { %s51_s23 = sshll.u32 %s2020_s22, 4  ;;  %p1945_p2 = scmp.ne.s32.totalorder %s2617_s5, %s1944_s26  ;;  %s52_s23 = int_to_ptr.vmem [resolvable:$true] %s51_s23 }
  0x25   :  { %p1948_p3 = scmp.lt.u32.totalorder %s1944_s26, %s2617_s5 }
  0x27   :  { %p1950_p4 = pnand %p1948_p3, %p1945_p2 }
  0x29   :  { %1953 = shalt.err (!%p1950_p4)
}
  0x2a   :  { %s1954_s12 = scalar_lea.vmem %s52_s23, 512  ;;  %p1959_p6 = scmp.lt.s32.totalorder %s52_s23, %s52_s23 }
  0x2b   :  { %p1955_p5 = scmp.ne.s32.totalorder %s52_s23, %s1954_s12  ;;  %p1960_p7 = scmp.lt.s32.totalorder %s1954_s12, %s1954_s12 }
  0x2d   :  { %p1961_p8 = por %p1960_p7, %p1959_p6 }
  0x2f   :  { %p1962_p9 = pnand %p1961_p8, %p1955_p5 }
  0x31   :  { %1965 = shalt.err (!%p1962_p9)
}
  0x32   :  { %s2021_s1 = smov 128   ;;  %s2022_s20 = smov 8  }
  0x33   :  { %57 = dma.hbm_to_vmem [thread:$0]  %s2617_s5, 512, %s52_s23, [#allocation6], %s2021_s1, %s2021_s1, %s2022_s20  }
  0x34   :  { %s2023_s15 = smov [#allocation8]   ;;  %s1966_s21 = scalar_lea.hbm %s2621_s9, 512 }
  0x35   :  { %s69_s16 = sshll.u32 %s2023_s15, 4  ;;  %p1967_p10 = scmp.ne.s32.totalorder %s2621_s9, %s1966_s21  ;;  %s70_s16 = int_to_ptr.vmem [resolvable:$true] %s69_s16 }
  0x36   :  { %p1970_p11 = scmp.lt.u32.totalorder %s1966_s21, %s2621_s9 }
  0x38   :  { %p1972_p12 = pnand %p1970_p11, %p1967_p10 }
  0x3a   :  { %1975 = shalt.err (!%p1972_p12)
}
  0x3b   :  { %s1976_s25 = scalar_lea.vmem %s70_s16, 512  ;;  %p1981_p0 = scmp.lt.s32.totalorder %s70_s16, %s70_s16 }
  0x3c   :  { %p1977_p13 = scmp.ne.s32.totalorder %s70_s16, %s1976_s25  ;;  %p1982_p1 = scmp.lt.s32.totalorder %s1976_s25, %s1976_s25 }
  0x3e   :  { %p1983_p2 = por %p1982_p1, %p1981_p0 }
  0x40   :  { %p1984_p3 = pnand %p1983_p2, %p1977_p13 }
  0x42   :  { %1987 = shalt.err (!%p1984_p3)
}
  0x43   :  { %75 = dma.hbm_to_vmem [thread:$0]  %s2621_s9, 512, %s70_s16, [#allocation9], %s2021_s1, %s2021_s1, %s2022_s20  }
  0x44   :  { %2010 = dma.done.wait [#allocation3], 64  }
  0x45   :  { %2011 = vsyncadd [#allocation3], 4294967232 }
  0x46   :  { %2012 = dma.done.wait [#allocation6], 640  }
  0x47   :  { %2013 = vsyncadd [#allocation6], 4294966656 }
  0x48   :  { %2014 = dma.done.wait [#allocation9], 512  }
  0x49   :  { %2015 = vsyncadd [#allocation9], 4294966784  ;;  %vm101_vm0 = vcmask 1043456   ;;  %vm94_vm1 = vcmask 31744   ;;  %v92_v0 = vld [vmem:[#allocation2] sm:$0xf]  ;;  %v365_v15 = vlaneseq }
  0x4a   :  { %v90_v1 = vld [vmem:[%s2612_s0] sm:$0xff]  ;;  %v91_v2 = vld [vmem:[%s2612_s0 + $0x8] sm:$0xff]  ;;  %1752 = vmatprep.subr.msk.mxu0 %vm101_vm0, %v92_v0  ;;  %v182_v9 = vld [vmem:[%s2615_s3 + $0x10] sm:$0xff]  ;;  %vm191_vm2 = vcmask 261120   ;;  %v2024_v35 = vmov 0.0   ;;  %s2029_s2 = smov [#allocation10]  }
  0x4b   :  { %1754 = vmatprep.mubr.msk.f32.mxu0 %vm94_vm1, %v90_v1  ;;  %v180_v3 = vld [vmem:[%s2615_s3] sm:$0xff]  ;;  %v181_v4 = vld [vmem:[%s2615_s3 + $0x8] sm:$0xff]  ;;  %1753 = vmatpush3.msk.msra.mxu0 %vm101_vm0, %v92_v0  ;;  %v183_v10 = vld [vmem:[%s2615_s3 + $0x18] sm:$0xff]  ;;  %v2157_v16 = vshrl.u32 %v365_v15, 7  ;;  %v2025_v36 = vmov 1966171168  }
  0x4c   :  { %v273_v5 = vld [vmem:[#allocation7] sm:$0xff]  ;;  %v1800_v6 = vpack.c.bf16 %v181_v4, %v180_v3  ;;  %v274_v7 = vld [vmem:[#allocation7 + $0x8] sm:$0xff]  ;;  %1755 = vmatmul.mubr.msk.f32.vlgmr.msra.gmra.mrb[0].mxu0 %vm94_vm1, %v91_v2  ;;  %v275_v11 = vld [vmem:[#allocation7 + $0x10] sm:$0xff]  ;;  %v1804_v12 = vpack.c.bf16 %v183_v10, %v182_v9  ;;  %v363_v37 = vunpack.c.l.s4 %v2025_v36  ;;  %s1703_s18 = sshll.u32 %s2029_s2, 4  ;;  %s1704_s18 = int_to_ptr.vmem [resolvable:$true] %s1703_s18 }
  0x4d   :  { %v1808_v8 = vpack.c.bf16 %v274_v7, %v273_v5  ;;  %v276_v13 = vld [vmem:[#allocation7 + $0x18] sm:$0xff]  ;;  %v2162_v17 = vld [vmem:[%s2620_s8] sm:$0xff]  ;;  %v2165_v18 = vsub.s32 0, %v2157_v16  ;;  %v2168_v19 = vsub.s32 1, %v2157_v16  ;;  %v2171_v20 = vsub.s32 2, %v2157_v16  ;;  %s1988_s22 = scalar_lea.vmem %s1704_s18, 32  ;;  %p1993_p5 = scmp.lt.s32.totalorder %s1704_s18, %s1704_s18 }
  0x4e   :  { %1801 = vmatprep.subr.bf16.mxu1 %v1800_v6  ;;  %v1812_v14 = vpack.c.bf16 %v276_v13, %v275_v11  ;;  %v2174_v21 = vsub.s32 4, %v2157_v16  ;;  %v2183_v25 = vsub.s32 3, %v2157_v16  ;;  %v2190_v28 = vsub.s32 5, %v2157_v16  ;;  %v93_v30 = vld [vmem:[#allocation5] sm:$0xff]  ;;  %v1720_v39 = vld [vmem:[%s2618_s6] ss:$0 sm:$0xff]  ;;  %p1989_p4 = scmp.ne.s32.totalorder %s1704_s18, %s1988_s22  ;;  %p1994_p6 = scmp.lt.s32.totalorder %s1988_s22, %s1988_s22 }
  0x4f   :  { %1809 = vmatprep.subr.bf16.mxu0 %v1808_v8  ;;  %1803 = vmatpush3.bf16.msra.mxu1 %v1800_v6  ;;  %v686_v22 = vrot.slane %v2162_v17, %v2168_v19  ;;  %v679_v23 = vrot.slane %v2162_v17, %v2165_v18  ;;  %v693_v24 = vrot.slane %v2162_v17, %v2171_v20  ;;  %v364_v38 = vunpack.c.0.s8 %v363_v37  ;;  %v1717_v40 = vld [vmem:[%s2616_s4] ss:$0 sm:$0xff] }
  0x50   :  { %1811 = vmatpush3.bf16.msra.mxu0 %v1808_v8  ;;  %1805 = vmatprep.subr.bf16.mxu1 %v1804_v12  ;;  %v707_v26 = vrot.slane %v2162_v17, %v2174_v21  ;;  %v700_v27 = vrot.slane %v2162_v17, %v2183_v25  ;;  %v714_v29 = vrot.slane %v2162_v17, %v2190_v28  ;;  %p1995_p7 = por %p1994_p6, %p1993_p5 }
  0x51   :  { %1813 = vmatprep.subr.bf16.mxu0 %v1812_v14  ;;  %688 = vbcast.lane.b32.xlu1 %v686_v22, 256  ;;  %v367_v41 = vsub.s32 %v364_v38, %v2157_v16 }
  0x52   :  { %681 = vbcast.lane.b32.xlu0 %v679_v23, 256  ;;  %p1996_p8 = pnand %p1995_p7, %p1989_p4 }
  0x53   :  { %1807 = vmatpush3.bf16.msra.mxu1 %v1804_v12 }
  0x54   :  { %1815 = vmatpush3.bf16.msra.mxu0 %v1812_v14 }
  0x55   :  { %695 = vbcast.lane.b32.xlu1 %v693_v24, 256  ;;  %1779 = vmatprep.subr.mxu0 %v2024_v35 }
  0x56   :  { %709 = vbcast.lane.b32.xlu0 %v707_v26, 256 }
  0x59   :  { %702 = vbcast.lane.b32.xlu1 %v700_v27, 256 }
  0x5d   :  { %716 = vbcast.lane.b32.xlu1 %v714_v29, 256  ;;  %v2242_v29 = vld [vmem:[%s2619_s7] ss:$0 sm:$0xff] }
 0x11f   :  { %v1756_v31 = vpop.f32.mrb[0].mxu0 }
 0x120   :  { %v171_v32 = vpop.f32.mrb[1].mxu0  ;;  %v177_v34 = vadd.f32 %v1756_v31, %v93_v30 }
 0x121   :  { %v172_v33 = vadd.f32 %v171_v32, %v93_v30 }
 0x123   :  { %1765 = vmatprep.mubr.msk.f32.mxu1 %vm191_vm2, %v172_v33  ;;  %1776 = vmatprep.mubr.msk.f32.mxu0 %vm191_vm2, %v172_v33 }
 0x124   :  { %1766 = vmatmul.mubr.msk.f32.vlgmr.msra.gmra.mrb[0].mxu1 %vm191_vm2, %v177_v34  ;;  %1777 = vmatmul.mubr.msk.f32.vlgmr.msra.gmra.mrb[2].mxu0 %vm191_vm2, %v177_v34 }
 0x1f7   :  { %v1767_v42 = vpop.f32.mrb[0].mxu1  ;;  %v1778_v43 = vpop.f32.mrb[2].mxu0 }
 0x1f8   :  { %v356_v44 = vadd.f32 %v1778_v43, %v1720_v39  ;;  %v264_v45 = vpop.f32.mrb[1].mxu1  ;;  %v350_v46 = vpop.f32.mrb[3].mxu0  ;;  %v2221_v8 = vadd.f32 %v1767_v42, %v1717_v40 }
 0x1f9   :  { %v2206_v47 = vadd.f32 %v1717_v40, %v264_v45  ;;  %v351_v48 = vadd.f32 %v1720_v39, %v350_v46 }
 0x1fa   :  { %v410_v49 = vcombine.high %v356_v44, %v356_v44  ;;  %v417_v50 = vrot.slane %v356_v44, %v367_v41 }
 0x1fb   :  { %v361_v51 = vcombine.high %v351_v48, %v351_v48  ;;  %v368_v52 = vrot.slane %v351_v48, %v367_v41  ;;  %1780 = vmatpush3.msra.mxu0 %v2206_v47 }
 0x1fc   :  { %v424_v53 = vrot.slane %v410_v49, %v367_v41  ;;  %v425_v54 = vcombine.high %v417_v50, %v417_v50  ;;  %v433_v55 = vrot.slane %v417_v50, %v367_v41  ;;  %1784 = vmatprep.subr.mxu0 %v2024_v35 }
 0x1fd   :  { %v375_v56 = vrot.slane %v361_v51, %v367_v41  ;;  %v376_v57 = vcombine.high %v368_v52, %v368_v52  ;;  %v384_v58 = vrot.slane %v368_v52, %v367_v41 }
 0x1fe   :  { %v426_v59 = vcombine.high %v424_v53, %v424_v53  ;;  %v2210_v60 = vrot.slane %v424_v53, %v367_v41  ;;  %v447_v61 = vrot.slane %v425_v54, %v367_v41  ;;  %v455_v62 = vcombine.high %v433_v55, %v433_v55 }
 0x1ff   :  { %v377_v63 = vcombine.high %v375_v56, %v375_v56  ;;  %v2212_v0 = vrot.slane %v375_v56, %v367_v41  ;;  %v2214_v1 = vrot.slane %v376_v57, %v367_v41  ;;  %v494_v2 = vrot.slane %v433_v55, %v2165_v18 }
 0x200   :  { %v498_v3 = vrot.slane %v447_v61, %v2165_v18  ;;  %v457_v4 = vcombine.high %v447_v61, %v447_v61  ;;  %v502_v5 = vrot.slane %v455_v62, %v2165_v18  ;;  %v510_v6 = vrot.slane %v2210_v60, %v2165_v18 }
 0x201   :  { %v406_v7 = vcombine.high %v384_v58, %v384_v58  ;;  %v2223_v9 = vrot.slane %v426_v59, %v367_v41  ;;  %v456_v10 = vcombine.high %v2210_v60, %v2210_v60  ;;  %v462_v11 = vrot.slane %v384_v58, %v2165_v18 }
 0x202   :  { %v2228_v12 = vrot.slane %v377_v63, %v367_v41  ;;  %v466_v13 = vrot.slane %v2214_v1, %v2165_v18  ;;  %v478_v22 = vrot.slane %v2212_v0, %v2165_v18  ;;  %v547_v23 = vadd.f32 %v494_v2, %v2221_v8 }
 0x203   :  { %v470_v14 = vrot.slane %v406_v7, %v2165_v18  ;;  %v548_v24 = vadd.f32 %v498_v3, %v2221_v8  ;;  %v539_v26 = vadd.f32 %v462_v11, %v2206_v47  ;;  %v549_v27 = vadd.f32 %v502_v5, %v2221_v8 }
 0x204   :  { %v551_v30 = vadd.f32 %v510_v6, %v2221_v8  ;;  %v540_v32 = vadd.f32 %v466_v13, %v2206_v47  ;;  %v506_v33 = vrot.slane %v457_v4, %v2165_v18  ;;  %vm563_vm3 = vcmp.ge.f32.partialorder %v547_v23, 0.0 }
 0x205   :  { %v541_v31 = vadd.f32 %v470_v14, %v2206_v47  ;;  %v579_v34 = vmul.f32 0.2, %v547_v23  ;;  %vm564_vm4 = vcmp.ge.f32.partialorder %v548_v24, 0.0  ;;  %v580_v36 = vmul.f32 0.2, %v548_v24 }
 0x206   :  { %vm555_vm5 = vcmp.ge.f32.partialorder %v539_v26, 0.0  ;;  %v571_v37 = vmul.f32 0.2, %v539_v26  ;;  %vm565_vm6 = vcmp.ge.f32.partialorder %v549_v27, 0.0  ;;  %v581_v38 = vmul.f32 0.2, %v549_v27 }
 0x207   :  { %v595_v39 = vsel %vm563_vm3, %v547_v23, %v579_v34  ;;  %v596_v40 = vsel %vm564_vm4, %v548_v24, %v580_v36  ;;  %vm567_vm7 = vcmp.ge.f32.partialorder %v551_v30, 0.0  ;;  %v583_v41 = vmul.f32 0.2, %v551_v30 }
 0x208   :  { %v618_v42 = vmul.f32 %v2242_v29, %v595_v39  ;;  %v619_v43 = vmul.f32 %v2242_v29, %v596_v40  ;;  %v587_v44 = vsel %vm555_vm5, %v539_v26, %v571_v37  ;;  %v597_v45 = vsel %vm565_vm6, %v549_v27, %v581_v38 }
 0x209   :  { %v610_v46 = vmul.f32 %v2242_v29, %v587_v44  ;;  %v620_v48 = vmul.f32 %v2242_v29, %v597_v45  ;;  %v599_v49 = vsel %vm567_vm7, %v551_v30, %v583_v41  ;;  %vm557_vm8 = vcmp.ge.f32.partialorder %v541_v31, 0.0 }
 0x20a   :  { %v458_v50 = vcombine.high %v2223_v9, %v2223_v9  ;;  %v650_v51 = vsel %vm191_vm2, %v618_v42, 0.0  ;;  %v653_v52 = vsel %vm191_vm2, %v619_v43, 0.0  ;;  %v573_v53 = vmul.f32 0.2, %v541_v31 }
 0x20b   :  { %v407_v54 = vcombine.high %v2212_v0, %v2212_v0  ;;  %v408_v55 = vcombine.high %v2214_v1, %v2214_v1  ;;  %651 = vadd.xlane.f32.xlu0 %v650_v51  ;;  %654 = vadd.xlane.f32.xlu1 %v653_v52  ;;  %vm556_vm9 = vcmp.ge.f32.partialorder %v540_v32, 0.0  ;;  %v572_v56 = vmul.f32 0.2, %v540_v32 }
 0x20c   :  { %v622_v57 = vmul.f32 %v2242_v29, %v599_v49  ;;  %v589_v58 = vsel %vm557_vm8, %v541_v31, %v573_v53  ;;  %v550_v59 = vadd.f32 %v506_v33, %v2221_v8  ;;  %v543_v60 = vadd.f32 %v478_v22, %v2206_v47 }
 0x20d   :  { %v626_v61 = vsel %vm191_vm2, %v610_v46, 0.0  ;;  %v656_v62 = vsel %vm191_vm2, %v620_v48, 0.0  ;;  %v514_v63 = vrot.slane %v2223_v9, %v2165_v18  ;;  %v518_v0 = vrot.slane %v456_v10, %v2165_v18 }
 0x20e   :  { %v612_v1 = vmul.f32 %v2242_v29, %v589_v58  ;;  %v588_v2 = vsel %vm556_vm9, %v540_v32, %v572_v56  ;;  %vm566_vm10 = vcmp.ge.f32.partialorder %v550_v59, 0.0  ;;  %v582_v3 = vmul.f32 0.2, %v550_v59 }
 0x20f   :  { %627 = vadd.xlane.f32.xlu0 %v626_v61  ;;  %657 = vadd.xlane.f32.xlu1 %v656_v62  ;;  %vm559_vm11 = vcmp.ge.f32.partialorder %v543_v60, 0.0  ;;  %v575_v4 = vmul.f32 0.2, %v543_v60  ;;  %v552_v5 = vadd.f32 %v514_v63, %v2221_v8  ;;  %v553_v6 = vadd.f32 %v518_v0, %v2221_v8 }
 0x210   :  { %v409_v7 = vcombine.high %v2228_v12, %v2228_v12  ;;  %v598_v11 = vsel %vm566_vm10, %v550_v59, %v582_v3  ;;  %v474_v9 = vrot.slane %v408_v55, %v2165_v18  ;;  %v486_v10 = vrot.slane %v407_v54, %v2165_v18 }
 0x211   :  { %v611_v13 = vmul.f32 %v2242_v29, %v588_v2  ;;  %v621_v14 = vmul.f32 %v2242_v29, %v598_v11  ;;  %vm568_vm12 = vcmp.ge.f32.partialorder %v552_v5, 0.0  ;;  %v584_v22 = vmul.f32 0.2, %v552_v5  ;;  %v689_v11 = vpop.permute.xlu1 %688 }
 0x212   :  { %v662_v23 = vsel %vm191_vm2, %v622_v57, 0.0  ;;  %v632_v24 = vsel %vm191_vm2, %v612_v1, 0.0  ;;  %v591_v26 = vsel %vm559_vm11, %v543_v60, %v575_v4  ;;  %v542_v27 = vadd.f32 %v474_v9, %v2206_v47 }
 0x213   :  { %663 = vadd.xlane.f32.xlu0 %v662_v23  ;;  %633 = vadd.xlane.f32.xlu1 %v632_v24  ;;  %v600_v30 = vsel %vm568_vm12, %v552_v5, %v584_v22  ;;  %v585_v31 = vmul.f32 0.2, %v553_v6  ;;  %v545_v32 = vadd.f32 %v486_v10, %v2206_v47  ;;  %v482_v33 = vrot.slane %v2228_v12, %v2165_v18 }
 0x214   :  { %vm569_vm13 = vcmp.ge.f32.partialorder %v553_v6, 0.0  ;;  %vm558_vm14 = vcmp.ge.f32.partialorder %v542_v27, 0.0  ;;  %v629_v34 = vsel %vm191_vm2, %v611_v13, 0.0  ;;  %v659_v36 = vsel %vm191_vm2, %v621_v14, 0.0  ;;  %v682_v13 = vpop.permute.xlu0 %681 }
 0x215   :  { %v614_v37 = vmul.f32 %v2242_v29, %v591_v26  ;;  %v574_v38 = vmul.f32 0.2, %v542_v27  ;;  %v623_v39 = vmul.f32 %v2242_v29, %v600_v30  ;;  %v544_v40 = vadd.f32 %v482_v33, %v2206_v47  ;;  %v696_v9 = vpop.permute.xlu1 %695 }
 0x216   :  { %v490_v41 = vrot.slane %v409_v7, %v2165_v18  ;;  %v522_v42 = vrot.slane %v458_v50, %v2165_v18  ;;  %v601_v12 = vsel %vm569_vm13, %v553_v6, %v585_v31  ;;  %v577_v44 = vmul.f32 0.2, %v545_v32 }
 0x217   :  { %630 = vadd.xlane.f32.xlu0 %v629_v34  ;;  %660 = vadd.xlane.f32.xlu1 %v659_v36  ;;  %v590_v43 = vsel %vm558_vm14, %v542_v27, %v574_v38  ;;  %vm561_vm15 = vcmp.ge.f32.partialorder %v545_v32, 0.0  ;;  %vm560_vm0 = vcmp.ge.f32.partialorder %v544_v40, 0.0  ;;  %v576_v45 = vmul.f32 0.2, %v544_v40 }
 0x218   :  { %v546_v46 = vadd.f32 %v490_v41, %v2206_v47  ;;  %v554_v48 = vadd.f32 %v522_v42, %v2221_v8  ;;  %v638_v49 = vsel %vm191_vm2, %v614_v37, 0.0  ;;  %v665_v51 = vsel %vm191_vm2, %v623_v39, 0.0  ;;  %v710_v22 = vpop.permute.xlu0 %709 }
 0x219   :  { %v624_v52 = vmul.f32 %v2242_v29, %v601_v12  ;;  %v613_v50 = vmul.f32 %v2242_v29, %v590_v43  ;;  %v2026_v53 = vmov 0   ;;  %v593_v54 = vsel %vm561_vm15, %v545_v32, %v577_v44  ;;  %v703_v10 = vpop.permute.xlu1 %702 }
 0x21a   :  { %1834 = vset.pattern.permute.xlu1 %v2026_v53  ;;  %1835 = vset.pattern.permute.xlu0 %v2026_v53  ;;  %v592_v55 = vsel %vm560_vm0, %v544_v40, %v576_v45  ;;  %v578_v56 = vmul.f32 0.2, %v546_v46  ;;  %vm562_vm1 = vcmp.ge.f32.partialorder %v546_v46, 0.0  ;;  %vm570_vm3 = vcmp.ge.f32.partialorder %v554_v48, 0.0 }
 0x21b   :  { %639 = vadd.xlane.f32.xlu0 %v638_v49  ;;  %666 = vadd.xlane.f32.xlu1 %v665_v51  ;;  %v586_v47 = vmul.f32 0.2, %v554_v48  ;;  %v668_v57 = vsel %vm191_vm2, %v624_v52, 0.0  ;;  %v635_v58 = vsel %vm191_vm2, %v613_v50, 0.0  ;;  %v616_v59 = vmul.f32 %v2242_v29, %v593_v54 }
 0x21c   :  { %v615_v60 = vmul.f32 %v2242_v29, %v592_v55  ;;  %v594_v61 = vsel %vm562_vm1, %v546_v46, %v578_v56  ;;  %v2307_v5 = vsub.s32 7, %v2157_v16  ;;  %v2312_v7 = vsub.s32 6, %v2157_v16 }
 0x21d   :  { %v602_v62 = vsel %vm570_vm3, %v554_v48, %v586_v47  ;;  %v644_v63 = vsel %vm191_vm2, %v616_v59, 0.0  ;;  %v617_v1 = vmul.f32 %v2242_v29, %v594_v61  ;;  %v717_v14 = vpop.permute.xlu1 %716  ;;  %vm886_vm4 = vcmask 1041409  }
 0x21e   :  { %v641_v0 = vsel %vm191_vm2, %v615_v60, 0.0  ;;  %v625_v2 = vmul.f32 %v2242_v29, %v602_v62  ;;  %v728_v6 = vrot.slane %v2162_v17, %v2307_v5  ;;  %v721_v29 = vrot.slane %v2162_v17, %v2312_v7 }
 0x21f   :  { %669 = vadd.xlane.f32.xlu0 %v668_v57  ;;  %636 = vadd.xlane.f32.xlu1 %v635_v58  ;;  %v647_v3 = vsel %vm191_vm2, %v617_v1, 0.0  ;;  %vm888_vm5 = vcmask 1042434   ;;  %vm890_vm6 = vcmask 1043459   ;;  %vm894_vm7 = vcmask 1045509  }
 0x220   :  { %v671_v4 = vsel %vm191_vm2, %v625_v2, 0.0  ;;  %v821_v2 = vand.u32 127, %v365_v15  ;;  %vm892_vm8 = vcmask 1044484   ;;  %vm896_vm9 = vcmask 1046534  }
 0x221   :  { %vm898_vm10 = vcmask 1047559   ;;  %vm909_vm11 = vcmask 64512   ;;  %vm2027_vm12 = vmmov 0  }
 0x222   :  { %1781 = vmatprep.mubr.msk.f32.mxu0 %vm2027_vm12, %v2024_v35  ;;  %1797 = vmatprep.mubr.msk.f32.mxu1 %vm2027_vm12, %v2024_v35 }
 0x223   :  { %645 = vadd.xlane.f32.xlu0 %v644_v63  ;;  %642 = vadd.xlane.f32.xlu1 %v641_v0 }
 0x227   :  { %648 = vadd.xlane.f32.xlu0 %v647_v3  ;;  %672 = vadd.xlane.f32.xlu1 %v671_v4 }
 0x238   :  { %730 = vbcast.lane.b32.xlu1 %v728_v6, 256  ;;  %v2366_v6 = vsub.s32 %v821_v2, %v2157_v16 }
 0x23d   :  { %723 = vbcast.lane.b32.xlu0 %v721_v29, 256 }
 0x298   :  { %v652_v23 = vpop.xlane.xlu0 %651  ;;  %v655_v24 = vpop.xlane.xlu1 %654 }
 0x299   :  { %v2316_v26 = vadd.f32 %v682_v13, %v652_v23  ;;  %v2322_v33 = vadd.f32 %v689_v11, %v655_v24 }
 0x29b   :  { %797 = vperm.xlu1 %1834, %v2316_v26  }
 0x29c   :  { %v628_v27 = vpop.xlane.xlu0 %627  ;;  %v658_v30 = vpop.xlane.xlu1 %657 }
 0x29d   :  { %v2319_v31 = vadd.f32 %v682_v13, %v628_v27  ;;  %v2328_v38 = vadd.f32 %v696_v9, %v658_v30 }
 0x29f   :  { %773 = vperm.xlu0 %1835, %v2319_v31  }
 0x2a0   :  { %v664_v17 = vpop.xlane.xlu0 %663  ;;  %v634_v32 = vpop.xlane.xlu1 %633 }
 0x2a1   :  { %v2324_v34 = vadd.f32 %v710_v22, %v664_v17  ;;  %v2334_v42 = vadd.f32 %v696_v9, %v634_v32 }
 0x2a3   :  { %800 = vperm.xlu0 %1835, %v2322_v33   ;;  %809 = vperm.xlu1 %1834, %v2324_v34  }
 0x2a4   :  { %v631_v36 = vpop.xlane.xlu0 %630  ;;  %v661_v37 = vpop.xlane.xlu1 %660 }
 0x2a5   :  { %v2330_v39 = vadd.f32 %v689_v11, %v631_v36  ;;  %v2336_v12 = vadd.f32 %v703_v10, %v661_v37 }
 0x2a7   :  { %803 = vperm.xlu0 %1835, %v2328_v38   ;;  %776 = vperm.xlu1 %1834, %v2330_v39  }
 0x2a8   :  { %v640_v40 = vpop.xlane.xlu0 %639  ;;  %v667_v41 = vpop.xlane.xlu1 %666 }
 0x2a9   :  { %v2340_v45 = vadd.f32 %v710_v22, %v640_v40  ;;  %v2349_v53 = vadd.f32 %v717_v14, %v667_v41 }
 0x2ab   :  { %806 = vperm.xlu0 %1835, %v2336_v12   ;;  %779 = vperm.xlu1 %1834, %v2334_v42  }
 0x2ac   :  { %v670_v43 = vpop.xlane.xlu0 %669  ;;  %v637_v44 = vpop.xlane.xlu1 %636 }
 0x2ad   :  { %v2342_v46 = vadd.f32 %v703_v10, %v637_v44 }
 0x2af   :  { %785 = vperm.xlu1 %1834, %v2340_v45   ;;  %782 = vperm.xlu0 %1835, %v2342_v46  }
 0x2b0   :  { %v646_v48 = vpop.xlane.xlu0 %645  ;;  %v643_v49 = vpop.xlane.xlu1 %642 }
 0x2b1   :  { %v2346_v51 = vadd.f32 %v717_v14, %v643_v49 }
 0x2b3   :  { %788 = vperm.xlu0 %1835, %v2346_v51  }
 0x2b4   :  { %v649_v52 = vpop.xlane.xlu0 %648  ;;  %v673_v50 = vpop.xlane.xlu1 %672 }
 0x2b7   :  { %812 = vperm.xlu0 %1835, %v2349_v53  }
 0x2b8   :  { %v724_v54 = vpop.permute.xlu0 %723  ;;  %v731_v55 = vpop.permute.xlu1 %730 }
 0x2b9   :  { %v2352_v56 = vadd.f32 %v724_v54, %v646_v48  ;;  %v2354_v47 = vadd.f32 %v731_v55, %v673_v50  ;;  %v2358_v57 = vadd.f32 %v731_v55, %v649_v52  ;;  %v2361_v58 = vadd.f32 %v724_v54, %v670_v43 }
 0x2bb   :  { %791 = vperm.xlu1 %1834, %v2352_v56   ;;  %818 = vperm.xlu0 %1835, %v2354_v47  }
 0x2bf   :  { %794 = vperm.xlu1 %1834, %v2358_v57  }
 0x2c3   :  { %815 = vperm.xlu1 %1834, %v2361_v58  }
 0x31a   :  { %v798_v60 = vpop.permute.xlu1 %797 }
 0x31b   :  { %v857_v32 = vrot.slane %v798_v60, %v2366_v6 }
 0x31e   :  { %v774_v59 = vpop.permute.xlu0 %773 }
 0x31f   :  { %v825_v13 = vrot.slane %v774_v59, %v2366_v6 }
 0x322   :  { %v801_v61 = vpop.permute.xlu0 %800  ;;  %v810_v62 = vpop.permute.xlu1 %809 }
 0x323   :  { %v861_v15 = vrot.slane %v801_v61, %v2366_v6  ;;  %v873_v59 = vrot.slane %v810_v62, %v2366_v6 }
 0x325   :  { %v900_v41 = vsel %vm886_vm4, %v861_v15, %v857_v32 }
 0x326   :  { %v804_v63 = vpop.permute.xlu0 %803  ;;  %v777_v0 = vpop.permute.xlu1 %776 }
 0x327   :  { %v829_v29 = vrot.slane %v777_v0, %v2366_v6  ;;  %v865_v24 = vrot.slane %v804_v63, %v2366_v6 }
 0x329   :  { %v887_v22 = vsel %vm886_vm4, %v829_v29, %v825_v13  ;;  %v901_v48 = vsel %vm888_vm5, %v865_v24, %v900_v41 }
 0x32a   :  { %v807_v1 = vpop.permute.xlu0 %806  ;;  %v780_v4 = vpop.permute.xlu1 %779 }
 0x32b   :  { %v833_v9 = vrot.slane %v780_v4, %v2366_v6  ;;  %v869_v36 = vrot.slane %v807_v1, %v2366_v6 }
 0x32d   :  { %v889_v23 = vsel %vm888_vm5, %v833_v9, %v887_v22  ;;  %v902_v50 = vsel %vm890_vm6, %v869_v36, %v901_v48 }
 0x32e   :  { %v783_v3 = vpop.permute.xlu0 %782  ;;  %v786_v10 = vpop.permute.xlu1 %785  ;;  %v903_v1 = vsel %vm892_vm8, %v873_v59, %v902_v50 }
 0x32f   :  { %v837_v14 = vrot.slane %v783_v3, %v2366_v6  ;;  %v841_v37 = vrot.slane %v786_v10, %v2366_v6 }
 0x331   :  { %v891_v27 = vsel %vm890_vm6, %v837_v14, %v889_v23 }
 0x332   :  { %v789_v11 = vpop.permute.xlu0 %788  ;;  %v893_v43 = vsel %vm892_vm8, %v841_v37, %v891_v27 }
 0x333   :  { %v845_v30 = vrot.slane %v789_v11, %v2366_v6 }
 0x335   :  { %v895_v49 = vsel %vm894_vm7, %v845_v30, %v893_v43 }
 0x336   :  { %v813_v17 = vpop.permute.xlu0 %812 }
 0x337   :  { %v877_v54 = vrot.slane %v813_v17, %v2366_v6 }
 0x339   :  { %v904_v3 = vsel %vm894_vm7, %v877_v54, %v903_v1 }
 0x33a   :  { %v792_v16 = vpop.permute.xlu1 %791  ;;  %v819_v60 = vpop.permute.xlu0 %818 }
 0x33b   :  { %v849_v40 = vrot.slane %v792_v16, %v2366_v6  ;;  %v885_v4 = vrot.slane %v819_v60, %v2366_v6 }
 0x33d   :  { %v897_v55 = vsel %vm896_vm9, %v849_v40, %v895_v49 }
 0x33e   :  { %v795_v44 = vpop.permute.xlu1 %794 }
 0x33f   :  { %v853_v52 = vrot.slane %v795_v44, %v2366_v6 }
 0x341   :  { %v899_v61 = vsel %vm898_vm10, %v853_v52, %v897_v55 }
 0x342   :  { %v816_v63 = vpop.permute.xlu1 %815  ;;  %v910_v0 = vsel %vm909_vm11, %v899_v61, -inf }
 0x343   :  { %v881_v2 = vrot.slane %v816_v63, %v2366_v6  ;;  %911 = vmax.xlane.f32.xlu1 %v910_v0 }
 0x345   :  { %v905_v29 = vsel %vm896_vm9, %v881_v2, %v904_v3 }
 0x346   :  { %v906_v11 = vsel %vm898_vm10, %v885_v4, %v905_v29 }
 0x347   :  { %v913_v62 = vsel %vm909_vm11, %v906_v11, -inf }
 0x348   :  { %914 = vmax.xlane.f32.xlu0 %v913_v62 }
 0x3d0   :  { %v912_v14 = vpop.xlane.xlu1 %911 }
 0x3d1   :  { %v925_v24 = vrot.slane %v912_v14, %v2168_v19  ;;  %v929_v37 = vrot.slane %v912_v14, %v2171_v20  ;;  %v945_v52 = vrot.slane %v912_v14, %v2312_v7  ;;  %v941_v54 = vrot.slane %v912_v14, %v2190_v28 }
 0x3d3   :  { %v999_v40 = vsub.f32 %v2330_v39, %v925_v24  ;;  %v1000_v44 = vsub.f32 %v2334_v42, %v929_v37  ;;  %v1004_v61 = vsub.f32 %v2352_v56, %v945_v52  ;;  %v1003_v63 = vsub.f32 %v2346_v51, %v941_v54 }
 0x3d5   :  { %v2400_v9 = vpop.xlane.xlu0 %914  ;;  %v1016_v48 = vmul.f32 1.442695, %v999_v40  ;;  %v1026_v56 = vmul.f32 1.442695, %v1004_v61  ;;  %v1024_v51 = vmul.f32 1.442695, %v1003_v63 }
 0x3d6   :  { %v953_v10 = vrot.slane %v2400_v9, %v2165_v18  ;;  %v957_v13 = vrot.slane %v2400_v9, %v2168_v19  ;;  %v961_v22 = vrot.slane %v2400_v9, %v2171_v20  ;;  %v969_v15 = vrot.slane %v2400_v9, %v2174_v21 }
 0x3d7   :  { %v965_v30 = vrot.slane %v2400_v9, %v2183_v25  ;;  %v973_v0 = vrot.slane %v2400_v9, %v2190_v28  ;;  %v977_v4 = vrot.slane %v2400_v9, %v2312_v7  ;;  %v981_v29 = vrot.slane %v2400_v9, %v2307_v5 }
 0x3d8   :  { %v1006_v23 = vsub.f32 %v2316_v26, %v953_v10  ;;  %v1007_v16 = vsub.f32 %v2322_v33, %v957_v13  ;;  %v1010_v27 = vsub.f32 %v2324_v34, %v969_v15  ;;  %v1008_v17 = vsub.f32 %v2328_v38, %v961_v22 }
 0x3d9   :  { %v921_v26 = vrot.slane %v912_v14, %v2165_v18  ;;  %v1009_v33 = vsub.f32 %v2336_v12, %v965_v30  ;;  %v937_v34 = vrot.slane %v912_v14, %v2174_v21  ;;  %v933_v38 = vrot.slane %v912_v14, %v2183_v25 }
 0x3da   :  { %v1030_v32 = vmul.f32 1.442695, %v1006_v23  ;;  %v1032_v36 = vmul.f32 1.442695, %v1007_v16  ;;  %v1038_v41 = vmul.f32 1.442695, %v1010_v27  ;;  %v1011_v11 = vsub.f32 %v2349_v53, %v973_v0 }
 0x3db   :  { %v1034_v43 = vmul.f32 1.442695, %v1008_v17  ;;  %v998_v49 = vsub.f32 %v2319_v31, %v921_v26  ;;  %v1036_v39 = vmul.f32 1.442695, %v1009_v33  ;;  %v1002_v50 = vsub.f32 %v2340_v45, %v937_v34 }
 0x3dc   :  { %1836 = vpow2.f32 %v1030_v32  ;;  %v1018_v12 = vmul.f32 1.442695, %v1000_v44  ;;  %v1001_v55 = vsub.f32 %v2342_v46, %v933_v38  ;;  %v949_v31 = vrot.slane %v912_v14, %v2307_v5 }
 0x3dd   :  { %1838 = vpow2.f32 %v1032_v36  ;;  %v1014_v59 = vmul.f32 1.442695, %v998_v49  ;;  %v1022_v45 = vmul.f32 1.442695, %v1002_v50  ;;  %v1012_v13 = vsub.f32 %v2361_v58, %v977_v4 }
 0x3de   :  { %1840 = vpow2.f32 %v1038_v41  ;;  %v1020_v46 = vmul.f32 1.442695, %v1001_v55  ;;  %v1005_v3 = vsub.f32 %v2358_v57, %v949_v31  ;;  %v1013_v14 = vsub.f32 %v2354_v47, %v981_v29 }
 0x3df   :  { %1842 = vpow2.f32 %v1034_v43  ;;  %v1040_v22 = vmul.f32 1.442695, %v1011_v11  ;;  %v1042_v53 = vmul.f32 1.442695, %v1012_v13 }
 0x3e0   :  { %1844 = vpow2.f32 %v1016_v48  ;;  %v1028_v57 = vmul.f32 1.442695, %v1005_v3  ;;  %v1044_v23 = vmul.f32 1.442695, %v1013_v14 }
 0x3e1   :  { %1846 = vpow2.f32 %v1036_v39 }
 0x3e2   :  { %1848 = vpow2.f32 %v1018_v12 }
 0x3e3   :  { %1850 = vpow2.f32 %v1014_v59 }
 0x3e4   :  { %1852 = vpow2.f32 %v1022_v45 }
 0x3e5   :  { %1854 = vpow2.f32 %v1020_v46 }
 0x3e6   :  { %v2429_v42 = vpop.eup %1836  ;;  %1856 = vpow2.f32 %v1026_v56 }
 0x3e7   :  { %v2431_v60 = vpop.eup %1838  ;;  %1087 = vperm.xlu1 %1834, %v2429_v42   ;;  %1858 = vpow2.f32 %v1024_v51 }
 0x3e8   :  { %1090 = vperm.xlu0 %1835, %v2431_v60   ;;  %v2440_v1 = vpop.eup %1840  ;;  %1860 = vpow2.f32 %v1028_v57 }
 0x3e9   :  { %v2442_v2 = vpop.eup %1842  ;;  %1862 = vpow2.f32 %v1040_v22 }
 0x3ea   :  { %v2452_v62 = vpop.eup %1844  ;;  %1864 = vpow2.f32 %v1042_v53 }
 0x3eb   :  { %1099 = vperm.xlu1 %1834, %v2440_v1   ;;  %v2454_v10 = vpop.eup %1846  ;;  %1866 = vpow2.f32 %v1044_v23 }
 0x3ec   :  { %1093 = vperm.xlu0 %1835, %v2442_v2   ;;  %v2460_v15 = vpop.eup %1848 }
 0x3ed   :  { %v2462_v9 = vpop.eup %1850 }
 0x3ee   :  { %v2466_v16 = vpop.eup %1852 }
 0x3ef   :  { %1066 = vperm.xlu1 %1834, %v2452_v62   ;;  %v2468_v58 = vpop.eup %1854 }
 0x3f0   :  { %1096 = vperm.xlu0 %1835, %v2454_v10   ;;  %v2472_v47 = vpop.eup %1856 }
 0x3f1   :  { %v2474_v24 = vpop.eup %1858 }
 0x3f2   :  { %v2478_v27 = vpop.eup %1860 }
 0x3f3   :  { %1069 = vperm.xlu1 %1834, %v2460_v15   ;;  %v2480_v30 = vpop.eup %1862 }
 0x3f4   :  { %1063 = vperm.xlu0 %1835, %v2462_v9   ;;  %v2484_v17 = vpop.eup %1864 }
 0x3f5   :  { %v2486_v32 = vpop.eup %1866 }
 0x3f7   :  { %1075 = vperm.xlu1 %1834, %v2466_v16  }
 0x3f8   :  { %1072 = vperm.xlu0 %1835, %v2468_v58  }
 0x3fb   :  { %1081 = vperm.xlu1 %1834, %v2472_v47  }
 0x3fc   :  { %1078 = vperm.xlu0 %1835, %v2474_v24  }
 0x3ff   :  { %1084 = vperm.xlu1 %1834, %v2478_v27  }
 0x400   :  { %1102 = vperm.xlu0 %1835, %v2480_v30  }
 0x403   :  { %1105 = vperm.xlu1 %1834, %v2484_v17  }
 0x404   :  { %1108 = vperm.xlu0 %1835, %v2486_v32  }
 0x466   :  { %v1088_v36 = vpop.permute.xlu1 %1087 }
 0x467   :  { %v1091_v37 = vpop.permute.xlu0 %1090  ;;  %v1145_v59 = vrot.slane %v1088_v36, %v2366_v6 }
 0x468   :  { %v1149_v55 = vrot.slane %v1091_v37, %v2366_v6 }
 0x46a   :  { %v1100_v40 = vpop.permute.xlu1 %1099  ;;  %v1181_v4 = vsel %vm886_vm4, %v1149_v55, %v1145_v59 }
 0x46b   :  { %v1094_v41 = vpop.permute.xlu0 %1093  ;;  %v1161_v23 = vrot.slane %v1100_v40, %v2366_v6 }
 0x46c   :  { %v1153_v45 = vrot.slane %v1094_v41, %v2366_v6 }
 0x46e   :  { %v1067_v26 = vpop.permute.xlu1 %1066  ;;  %v1182_v11 = vsel %vm888_vm5, %v1153_v45, %v1181_v4 }
 0x46f   :  { %v1097_v33 = vpop.permute.xlu0 %1096  ;;  %v1117_v44 = vrot.slane %v1067_v26, %v2366_v6 }
 0x470   :  { %v1157_v46 = vrot.slane %v1097_v33, %v2366_v6 }
 0x472   :  { %v1070_v43 = vpop.permute.xlu1 %1069  ;;  %v1183_v14 = vsel %vm890_vm6, %v1157_v46, %v1182_v11 }
 0x473   :  { %v1064_v34 = vpop.permute.xlu0 %1063  ;;  %v1121_v38 = vrot.slane %v1070_v43, %v2366_v6  ;;  %v1184_v26 = vsel %vm892_vm8, %v1161_v23, %v1183_v14 }
 0x474   :  { %v1113_v48 = vrot.slane %v1064_v34, %v2366_v6 }
 0x476   :  { %v1174_v49 = vsel %vm886_vm4, %v1117_v44, %v1113_v48  ;;  %v1076_v39 = vpop.permute.xlu1 %1075 }
 0x477   :  { %v1073_v52 = vpop.permute.xlu0 %1072  ;;  %v1175_v12 = vsel %vm888_vm5, %v1121_v38, %v1174_v49  ;;  %v1129_v54 = vrot.slane %v1076_v39, %v2366_v6 }
 0x478   :  { %v1125_v50 = vrot.slane %v1073_v52, %v2366_v6 }
 0x47a   :  { %v1176_v31 = vsel %vm890_vm6, %v1125_v50, %v1175_v12  ;;  %v1082_v61 = vpop.permute.xlu1 %1081 }
 0x47b   :  { %v1079_v63 = vpop.permute.xlu0 %1078  ;;  %v1137_v3 = vrot.slane %v1082_v61, %v2366_v6  ;;  %v1177_v56 = vsel %vm892_vm8, %v1129_v54, %v1176_v31 }
 0x47c   :  { %v1133_v0 = vrot.slane %v1079_v63, %v2366_v6 }
 0x47e   :  { %v1178_v51 = vsel %vm894_vm7, %v1133_v0, %v1177_v56  ;;  %v1085_v29 = vpop.permute.xlu1 %1084 }
 0x47f   :  { %v1103_v57 = vpop.permute.xlu0 %1102  ;;  %v1141_v13 = vrot.slane %v1085_v29, %v2366_v6  ;;  %v1179_v53 = vsel %vm896_vm9, %v1137_v3, %v1178_v51 }
 0x480   :  { %v1165_v22 = vrot.slane %v1103_v57, %v2366_v6 }
 0x481   :  { %v1180_v36 = vsel %vm898_vm10, %v1141_v13, %v1179_v53 }
 0x482   :  { %v1106_v37 = vpop.permute.xlu1 %1105  ;;  %v1190_v41 = vsel %vm909_vm11, %v1180_v36, 0.0  ;;  %v1185_v34 = vsel %vm894_vm7, %v1165_v22, %v1184_v26 }
 0x483   :  { %v1109_v33 = vpop.permute.xlu0 %1108  ;;  %v1169_v43 = vrot.slane %v1106_v37, %v2366_v6  ;;  %1191 = vadd.xlane.f32.xlu1 %v1190_v41 }
 0x484   :  { %v1173_v44 = vrot.slane %v1109_v33, %v2366_v6 }
 0x485   :  { %v1186_v48 = vsel %vm896_vm9, %v1169_v43, %v1185_v34 }
 0x486   :  { %v1187_v38 = vsel %vm898_vm10, %v1173_v44, %v1186_v48 }
 0x487   :  { %v1193_v40 = vsel %vm909_vm11, %v1187_v38, 0.0 }
 0x488   :  { %1194 = vadd.xlane.f32.xlu0 %v1193_v40 }
 0x510   :  { %v1192_v54 = vpop.xlane.xlu1 %1191 }
 0x511   :  { %v1205_v59 = vrot.slane %v1192_v54, %v2168_v19  ;;  %v1201_v31 = vrot.slane %v1192_v54, %v2165_v18  ;;  %v1209_v61 = vrot.slane %v1192_v54, %v2171_v20  ;;  %v1213_v63 = vrot.slane %v1192_v54, %v2183_v25 }
 0x512   :  { %v1217_v3 = vrot.slane %v1192_v54, %v2174_v21  ;;  %v1229_v11 = vrot.slane %v1192_v54, %v2307_v5 }
 0x515   :  { %v1195_v49 = vpop.xlane.xlu0 %1194 }
 0x516   :  { %v1237_v39 = vrot.slane %v1195_v49, %v2168_v19  ;;  %v1233_v52 = vrot.slane %v1195_v49, %v2165_v18  ;;  %v1241_v50 = vrot.slane %v1195_v49, %v2171_v20  ;;  %v1249_v12 = vrot.slane %v1195_v49, %v2174_v21 }
 0x517   :  { %v1245_v55 = vrot.slane %v1195_v49, %v2183_v25  ;;  %v1221_v18 = vrot.slane %v1192_v54, %v2190_v28  ;;  %v1225_v25 = vrot.slane %v1192_v54, %v2312_v7  ;;  %v1253_v21 = vrot.slane %v1195_v49, %v2190_v28 }
 0x518   :  { %1868 = vrcp.f32 %v1237_v39  ;;  %v1257_v22 = vrot.slane %v1195_v49, %v2312_v7 }
 0x519   :  { %1870 = vrcp.f32 %v1233_v52 }
 0x51a   :  { %1872 = vrcp.f32 %v1241_v50 }
 0x51b   :  { %1874 = vrcp.f32 %v1249_v12 }
 0x51c   :  { %1876 = vrcp.f32 %v1245_v55 }
 0x51d   :  { %1878 = vrcp.f32 %v1205_v59 }
 0x51e   :  { %1880 = vrcp.f32 %v1201_v31 }
 0x51f   :  { %1882 = vrcp.f32 %v1209_v61 }
 0x520   :  { %1884 = vrcp.f32 %v1213_v63 }
 0x521   :  { %1886 = vrcp.f32 %v1217_v3 }
 0x522   :  { %v1869_v45 = vpop.eup %1868  ;;  %1888 = vrcp.f32 %v1221_v18 }
 0x523   :  { %v1871_v46 = vpop.eup %1870  ;;  %v1297_v0 = vmul.f32 %v1869_v45, %v2431_v60  ;;  %1890 = vrcp.f32 %v1225_v25 }
 0x524   :  { %v1873_v56 = vpop.eup %1872  ;;  %v1295_v4 = vmul.f32 %v1871_v46, %v2429_v42  ;;  %1892 = vrcp.f32 %v1253_v21 }
 0x525   :  { %v1875_v19 = vpop.eup %1874  ;;  %1465 = vperm.xlu0 %1835, %v1297_v0   ;;  %v1299_v20 = vmul.f32 %v1873_v56, %v2442_v2  ;;  %1894 = vrcp.f32 %v1229_v11 }
 0x526   :  { %1462 = vperm.xlu1 %1834, %v1295_v4   ;;  %v1877_v51 = vpop.eup %1876  ;;  %v1303_v60 = vmul.f32 %v1875_v19, %v2440_v1  ;;  %v1261_v1 = vrot.slane %v1195_v49, %v2307_v5 }
 0x527   :  { %v1879_v29 = vpop.eup %1878  ;;  %v1301_v42 = vmul.f32 %v1877_v51, %v2454_v10 }
 0x528   :  { %v1881_v57 = vpop.eup %1880  ;;  %v1281_v2 = vmul.f32 %v1879_v29, %v2452_v62  ;;  %1896 = vrcp.f32 %v1261_v1 }
 0x529   :  { %1468 = vperm.xlu0 %1835, %v1299_v20   ;;  %v1883_v13 = vpop.eup %1882  ;;  %v1279_v14 = vmul.f32 %v1881_v57, %v2462_v9  ;;  %1898 = vrcp.f32 %v1257_v22 }
 0x52a   :  { %1474 = vperm.xlu1 %1834, %v1303_v60   ;;  %v1885_v28 = vpop.eup %1884  ;;  %v1283_v10 = vmul.f32 %v1883_v13, %v2460_v15 }
 0x52b   :  { %v1887_v53 = vpop.eup %1886  ;;  %v1285_v62 = vmul.f32 %v1885_v28, %v2468_v58 }
 0x52c   :  { %v1889_v23 = vpop.eup %1888  ;;  %v1287_v36 = vmul.f32 %v1887_v53, %v2466_v16  ;;  %v1610_v53 = vld [vmem:[#allocation8] sm:$0xff] }
 0x52d   :  { %1471 = vperm.xlu0 %1835, %v1301_v42   ;;  %v1891_v37 = vpop.eup %1890  ;;  %v1289_v5 = vmul.f32 %v1889_v23, %v2474_v24  ;;  %v1612_v23 = vld [vmem:[#allocation8 + $0x10] sm:$0xff] }
 0x52e   :  { %1322 = vperm.xlu1 %1834, %v1281_v2   ;;  %v1893_v9 = vpop.eup %1892  ;;  %v1291_v7 = vmul.f32 %v1891_v37, %v2472_v47 }
 0x52f   :  { %v1895_v41 = vpop.eup %1894  ;;  %v1305_v15 = vmul.f32 %v1893_v9, %v2480_v30 }
 0x530   :  { %v1293_v58 = vmul.f32 %v1895_v41, %v2478_v27 }
 0x531   :  { %1319 = vperm.xlu0 %1835, %v1279_v14  }
 0x532   :  { %1325 = vperm.xlu1 %1834, %v1283_v10   ;;  %v1897_v26 = vpop.eup %1896 }
 0x533   :  { %v1899_v33 = vpop.eup %1898  ;;  %v1309_v16 = vmul.f32 %v1897_v26, %v2486_v32 }
 0x534   :  { %v1307_v43 = vmul.f32 %v1899_v33, %v2484_v17 }
 0x535   :  { %1328 = vperm.xlu0 %1835, %v1285_v62   ;;  %v1611_v62 = vld [vmem:[#allocation8 + $0x8] sm:$0xff] }
 0x536   :  { %1331 = vperm.xlu1 %1834, %v1287_v36   ;;  %v2028_v36 = vmov 0.0|0.0   ;;  %v1817_v37 = vpack.c.bf16 %v1611_v62, %v1610_v53 }
 0x537   :  { %1816 = vmatprep.subr.bf16.mxu1 %v2028_v36 }
 0x538   :  { %1818 = vmatpush3.bf16.msra.mxu1 %v1817_v37 }
 0x539   :  { %1334 = vperm.xlu0 %1835, %v1289_v5   ;;  %1819 = vmatprep.subr.bf16.mxu1 %v2028_v36 }
 0x53a   :  { %1337 = vperm.xlu1 %1834, %v1291_v7  }
 0x53d   :  { %1477 = vperm.xlu0 %1835, %v1305_v15  }
 0x53e   :  { %1340 = vperm.xlu1 %1834, %v1293_v58  }
 0x541   :  { %1483 = vperm.xlu0 %1835, %v1309_v16  }
 0x542   :  { %1480 = vperm.xlu1 %1834, %v1307_v43  }
 0x5a4   :  { %v1466_v47 = vpop.permute.xlu0 %1465 }
 0x5a5   :  { %v1463_v24 = vpop.permute.xlu1 %1462  ;;  %v1492_v31 = vrot.slane %v1466_v47, %v2366_v6 }
 0x5a6   :  { %v1488_v61 = vrot.slane %v1463_v24, %v2366_v6 }
 0x5a8   :  { %v1469_v30 = vpop.permute.xlu0 %1468  ;;  %v1517_v18 = vsel %vm886_vm4, %v1492_v31, %v1488_v61 }
 0x5a9   :  { %v1475_v27 = vpop.permute.xlu1 %1474  ;;  %v1496_v46 = vrot.slane %v1469_v30, %v2366_v6 }
 0x5aa   :  { %v1504_v42 = vrot.slane %v1475_v27, %v2366_v6 }
 0x5ab   :  { %v1518_v25 = vsel %vm888_vm5, %v1496_v46, %v1517_v18 }
 0x5ac   :  { %v1472_v34 = vpop.permute.xlu0 %1471 }
 0x5ad   :  { %v1323_v44 = vpop.permute.xlu1 %1322  ;;  %v1500_v0 = vrot.slane %v1472_v34, %v2366_v6 }
 0x5ae   :  { %v1349_v17 = vrot.slane %v1323_v44, %v2366_v6 }
 0x5af   :  { %v1519_v60 = vsel %vm890_vm6, %v1500_v0, %v1518_v25 }
 0x5b0   :  { %v1320_v48 = vpop.permute.xlu0 %1319  ;;  %v1520_v1 = vsel %vm892_vm8, %v1504_v42, %v1519_v60 }
 0x5b1   :  { %v1345_v32 = vrot.slane %v1320_v48, %v2366_v6  ;;  %v1326_v38 = vpop.permute.xlu1 %1325 }
 0x5b2   :  { %v1353_v40 = vrot.slane %v1326_v38, %v2366_v6  ;;  %v1726_v38 = vld [vmem:[%s2622_s10] ss:$0 sm:$0xff] }
 0x5b3   :  { %v1374_v49 = vsel %vm886_vm4, %v1349_v17, %v1345_v32 }
 0x5b4   :  { %v1329_v39 = vpop.permute.xlu0 %1328  ;;  %v1375_v12 = vsel %vm888_vm5, %v1353_v40, %v1374_v49 }
 0x5b5   :  { %v1357_v52 = vrot.slane %v1329_v39, %v2366_v6  ;;  %v1332_v50 = vpop.permute.xlu1 %1331 }
 0x5b6   :  { %v1361_v54 = vrot.slane %v1332_v50, %v2366_v6 }
 0x5b7   :  { %v1376_v55 = vsel %vm890_vm6, %v1357_v52, %v1375_v12 }
 0x5b8   :  { %v1335_v59 = vpop.permute.xlu0 %1334  ;;  %v1377_v3 = vsel %vm892_vm8, %v1361_v54, %v1376_v55 }
 0x5b9   :  { %v1365_v45 = vrot.slane %v1335_v59, %v2366_v6  ;;  %v1338_v63 = vpop.permute.xlu1 %1337 }
 0x5ba   :  { %v1369_v56 = vrot.slane %v1338_v63, %v2366_v6 }
 0x5bb   :  { %v1378_v4 = vsel %vm894_vm7, %v1365_v45, %v1377_v3 }
 0x5bc   :  { %v1478_v19 = vpop.permute.xlu0 %1477  ;;  %v1379_v29 = vsel %vm896_vm9, %v1369_v56, %v1378_v4 }
 0x5bd   :  { %v1341_v20 = vpop.permute.xlu1 %1340  ;;  %v1508_v21 = vrot.slane %v1478_v19, %v2366_v6 }
 0x5be   :  { %v1373_v51 = vrot.slane %v1341_v20, %v2366_v6 }
 0x5bf   :  { %v1521_v22 = vsel %vm894_vm7, %v1508_v21, %v1520_v1 }
 0x5c0   :  { %v1380_v11 = vsel %vm898_vm10, %v1373_v51, %v1379_v29  ;;  %v1484_v57 = vpop.permute.xlu0 %1483 }
 0x5c1   :  { %v1516_v2 = vrot.slane %v1484_v57, %v2366_v6  ;;  %1782 = vmatmul.mubr.msk.f32.vlgmr.msra.gmra.mrb[4].mxu0 %vm909_vm11, %v1380_v11  ;;  %v1481_v13 = vpop.permute.xlu1 %1480 }
 0x5c2   :  { %1785 = vmatpush3.msra.mxu0 %v2221_v8  ;;  %v1512_v14 = vrot.slane %v1481_v13, %v2366_v6  ;;  %1786 = vmatprep.mubr.msk.f32.mxu0 %vm2027_vm12, %v2024_v35  ;;  %v1613_v8 = vld [vmem:[#allocation8 + $0x18] sm:$0xff] }
 0x5c3   :  { %v1820_v6 = vpack.c.bf16 %v1613_v8, %v1612_v23 }
 0x5c4   :  { %v1522_v28 = vsel %vm896_vm9, %v1512_v14, %v1521_v22 }
 0x5c5   :  { %v1523_v10 = vsel %vm898_vm10, %v1516_v2, %v1522_v28  ;;  %1821 = vmatpush3.bf16.msra.mxu1 %v1820_v6 }
 0x5c6   :  { %1787 = vmatmul.mubr.msk.f32.vlgmr.msra.gmra.mrb[6].mxu0 %vm909_vm11, %v1523_v10 }
 0x694   :  { %v1449_v35 = vpop.f32.mrb[4].mxu0 }
 0x695   :  { %v1596_v5 = vsel %vm191_vm2, %v1449_v35, 0.0  ;;  %v1783_v9 = vpop.f32.mrb[5].mxu0 }
 0x696   :  { %v1597_v7 = vrot.slane %v1596_v5, 4 }
 0x698   :  { %v1598_v41 = vadd.f32 %v1597_v7, %v1596_v5 }
 0x699   :  { %v1592_v15 = vpop.f32.mrb[6].mxu0 }
 0x69a   :  { %v1599_v26 = vrot.slane %v1598_v41, 2  ;;  %v1603_v58 = vsel %vm191_vm2, %v1592_v15, 0.0  ;;  %v1788_v33 = vpop.f32.mrb[7].mxu0 }
 0x69b   :  { %v1604_v16 = vrot.slane %v1603_v58, 4 }
 0x69c   :  { %v1600_v43 = vadd.f32 %v1599_v26, %v1598_v41 }
 0x69d   :  { %v1605_v47 = vadd.f32 %v1604_v16, %v1603_v58 }
 0x69e   :  { %v1601_v30 = vrot.slane %v1600_v43, 1 }
 0x69f   :  { %v1606_v24 = vrot.slane %v1605_v47, 2 }
 0x6a0   :  { %v1602_v44 = vadd.f32 %v1601_v30, %v1600_v43 }
 0x6a1   :  { %v1607_v27 = vadd.f32 %v1606_v24, %v1605_v47 }
 0x6a3   :  { %v1608_v34 = vrot.slane %v1607_v27, 1 }
 0x6a5   :  { %v1609_v48 = vadd.f32 %v1608_v34, %v1607_v27 }
 0x6a7   :  { %v1623_v32 = vsel %vm886_vm4, %v1609_v48, %v1602_v44 }
 0x6a8   :  { %1798 = vmatmul.mubr.msk.f32.vlgmr.msra.gmra.mrb[2].mxu1 %vm191_vm2, %v1623_v32 }
 0x77b   :  { %v1692_v17 = vpop.f32.mrb[2].mxu1 }
 0x77c   :  { %v1693_v40 = vadd.f32 %v1726_v38, %v1692_v17  ;;  %v1799_v49 = vpop.f32.mrb[3].mxu1 }
 0x77e   :  { %1696 = vst [vmem:[#allocation10] sm:$0x3] %v1693_v40 }
 0x77f   :  { %1999 = shalt.err (!%p1996_p8)
}
 0x780   :  { %s2000_s5 = scalar_lea.hbm %s2623_s11, 32 }
 0x781   :  { %p2001_p9 = scmp.ne.s32.totalorder %s2623_s11, %s2000_s5  ;;  %p2004_p10 = scmp.lt.u32.totalorder %s2000_s5, %s2623_s11 }
 0x783   :  { %p2006_p11 = pnand %p2004_p10, %p2001_p9 }
 0x785   :  { %2009 = shalt.err (!%p2006_p11)
}
 0x786   :  { %1706 = dma.vmem_to_hbm [thread:$0]  %s1704_s18, 32, %s2623_s11, [#allocation4]  }
 0x787   :  { %2016 = dma.done.wait [#allocation4], 32  }
 0x788   :  { %2017 = vsyncadd [#allocation4], 4294967264 }
 0x789   :  { %1710 = vsyncpa [#allocation3], 1 }
 0x78a   :  { %1711 = vsyncpa [#allocation6], 1 }
 0x78b   :  { %1712 = vsyncpa [#allocation9], 1 }
 0x78c   :  { %1713 = vsyncpa [#allocation4], 1 }

</bundles_post_ra>
